<compile_context>
chip_gen: v7x
topology: tpu7x:2x2x1
jax: 0.10.0
libtpu: 0.0.40
codegen_flags: <defaults>
</compile_context>

<pallas_src>
import jax
import jax.numpy as jnp
from jax.experimental import pallas as pl
from jax.experimental.pallas import tpu as pltpu


def basic_block_kernel(xrow_ref, ident_ref, wts_ref, bn_ref, o_ref):
    # xrow_ref : (1, R, 3*L) bf16  im2row conv1 LHS (super-row layout, L = 2*W*C = 128)
    # ident_ref: (1, R, L)   f32   residual identity, same super-row layout
    # wts_ref  : (2, 3*L, L) bf16  stacked block-Toeplitz weights: [conv1, conv2]
    # bn_ref   : (4, L)      f32   fused BN rows: [scale1, bias1, scale2, bias2]
    # o_ref    : (1, R, L)   f32   lane-dense output slab
    R = o_ref.shape[1]
    L = o_ref.shape[2]

    s1 = bn_ref[0:1, :]
    b1 = bn_ref[1:2, :]
    s2 = bn_ref[2:3, :]
    b2 = bn_ref[3:4, :]

    # --- conv1: single MXU matmul, taps already folded into K by the wrapper ---
    acc1 = jnp.dot(xrow_ref[0], wts_ref[0], preferred_element_type=jnp.float32)

    # --- BN1 + ReLU (f32 math) ---
    y1 = jnp.maximum(acc1 * s1 + b1, 0.0)                      # (R, L) f32

    # --- conv2: in-register im2row via XLU sublane rolls (+ halo masks), one matmul ---
    row = jax.lax.broadcasted_iota(jnp.int32, (R, L), 0)
    y_prev = jnp.where(row == 0, 0.0, pltpu.roll(y1, shift=1, axis=0))       # y1[r-1]
    y_next = jnp.where(row == R - 1, 0.0, pltpu.roll(y1, shift=R - 1, axis=0))  # y1[r+1]
    y_cat = jnp.concatenate([y_prev, y1, y_next], axis=1).astype(jnp.bfloat16)  # (R, 3L)

    acc2 = jnp.dot(y_cat, wts_ref[1], preferred_element_type=jnp.float32)

    # --- BN2 + residual (f32 identity) + ReLU; 128-lane dense store ---
    o_ref[0] = jnp.maximum(acc2 * s2 + b2 + ident_ref[0], 0.0).astype(o_ref.dtype)


def _super_toeplitz(w_hwio, W, C):
    """(3, 3, Ci, Co) conv weights -> (3, 2*W*Ci, 2*W*Co) super-row block-Toeplitz taps.

    Lane layout: L = p*W*C + w*C + c with p = row parity (two image rows per super-row).
    Super-tap t in {0,1,2} corresponds to input super-row offset dy' = t - 1; within it
    the original kernel row is dy = 2*(t-1) + p_in - p_out + 1 and column dx = w_in - w_out + 1
    ('same' padding along x encoded by the invalid-offset zeros).
    """
    kH, kW, Ci, Co = w_hwio.shape
    L_in, L_out = 2 * W * Ci, 2 * W * Co
    li = jnp.arange(L_in)
    lo = jnp.arange(L_out)
    p_in, w_in, c_in = li // (W * Ci), (li // Ci) % W, li % Ci
    p_out, w_out, c_out = lo // (W * Co), (lo // Co) % W, lo % Co
    dx = w_in[:, None] - w_out[None, :] + (kW // 2)            # (L_in, L_out)
    mats = []
    for t in range(3):
        dy = 2 * (t - 1) + p_in[:, None] - p_out[None, :] + (kH // 2)
        valid = (dy >= 0) & (dy < kH) & (dx >= 0) & (dx < kW)
        vals = w_hwio[jnp.clip(dy, 0, kH - 1), jnp.clip(dx, 0, kW - 1),
                      c_in[:, None], c_out[None, :]]
        mats.append(jnp.where(valid, vals, 0.0))
    return jnp.stack(mats)                                     # (3, L_in, L_out)


def basic_block_forward(x_nchw, w1, w2, bn1, bn2, eps=1e-5):
    """x_nchw: (N, C, H, W). w1/w2: PyTorch OIHW conv weights. bn*: (gamma, beta, mean, var)."""
    N, Cin, H, W = x_nchw.shape
    Cout = w1.shape[0]
    assert Cin == Cout, "identity skip requires in_channel == out_channel (downsample=None)"
    assert H % 2 == 0, "super-row folding requires even H"
    C = Cout
    L = 2 * W * C            # lanes per super-row (128 for W=16, C=4)
    R = H // 2               # super-rows per image

    # NCHW -> super-row folded lane-dense (N, R, L); lane index = p*W*C + w*C + c.
    x_sup = jnp.transpose(x_nchw, (0, 2, 3, 1)).reshape(N, R, L).astype(jnp.float32)

    # conv1 im2row LHS in bf16: each row holds its 3-super-row window (zero halo rows).
    x_pad = jnp.pad(x_sup, ((0, 0), (1, 1), (0, 0)))
    xrow = jnp.concatenate(
        [x_pad[:, 0:R], x_pad[:, 1:R + 1], x_pad[:, 2:R + 2]], axis=2
    ).astype(jnp.bfloat16)                                     # (N, R, 3L)

    # OIHW -> HWIO -> stacked super-row block-Toeplitz matrices (3L, L), merged, bf16.
    # NOTE: weight footprint scales as (2*W*C)^2; keep this formulation for 2*W*C <= ~512-1024
    # (v7x has only 64 MiB VMEM) — for real ResNet channel counts switch to
    # channels-on-lanes with an H-row grid axis instead.
    w1_h = jnp.transpose(w1, (2, 3, 1, 0)).astype(jnp.float32)
    w2_h = jnp.transpose(w2, (2, 3, 1, 0)).astype(jnp.float32)
    t1 = _super_toeplitz(w1_h, W, C).reshape(3 * L, L)
    t2 = _super_toeplitz(w2_h, W, C).reshape(3 * L, L)
    wts = jnp.stack([t1, t2]).astype(jnp.bfloat16)             # (2, 3L, L)

    # Fused inference-mode BN, tiled over (parity, w) to the super-row lane layout,
    # merged into one (4, L) operand: [scale1, bias1, scale2, bias2].
    def fuse(bn):
        gamma, beta, mean, var = bn
        s = gamma / jnp.sqrt(var + eps)
        return jnp.tile(s, 2 * W), jnp.tile(beta - mean * s, 2 * W)

    s1, b1 = fuse(bn1)
    s2, b2 = fuse(bn2)
    bn = jnp.stack([s1, b1, s2, b2]).astype(jnp.float32)       # (4, L)

    flops = int(N * 2 * 2 * R * (3 * L) * L)                   # 2 convs x 2*M*K*N
    bytes_accessed = int(N * R * 3 * L * 2                     # bf16 im2row input
                         + N * R * L * 4                       # f32 identity
                         + 2 * 3 * L * L * 2                   # bf16 weights
                         + 4 * L * 4                           # BN params
                         + N * R * L * 4)                      # f32 output

    out_sup = pl.pallas_call(
        basic_block_kernel,
        out_shape=jax.ShapeDtypeStruct((N, R, L), jnp.float32),
        grid_spec=pltpu.PrefetchScalarGridSpec(
            num_scalar_prefetch=0,
            grid=(N,),   # one image per step; "parallel" -> both TCs on v7x.
                         # (On single-TC v5e/v6e, folding N into rows with grid=(1,)
                         #  would save ~0.35us/step and double MXU M-fill.)
            in_specs=[
                pl.BlockSpec((1, R, 3 * L), lambda n: (n, 0, 0)),   # conv1 im2row LHS (bf16)
                pl.BlockSpec((1, R, L), lambda n: (n, 0, 0)),       # identity (f32)
                pl.BlockSpec((2, 3 * L, L), lambda n: (0, 0, 0)),   # merged conv weights
                pl.BlockSpec((4, L), lambda n: (0, 0)),             # merged BN scale/bias
            ],
            out_specs=pl.BlockSpec((1, R, L), lambda n: (n, 0, 0)),
        ),
        compiler_params=pltpu.CompilerParams(dimension_semantics=("parallel",)),
        cost_estimate=pl.CostEstimate(flops=flops, transcendentals=0,
                                      bytes_accessed=bytes_accessed),
    )(xrow, x_sup, wts, bn)

    # (N, R, L) -> (N, H, W, C) -> NCHW
    return jnp.transpose(out_sup.reshape(N, H, W, C), (0, 3, 1, 2))


def reference_forward(x_nchw, w1, w2, bn1, bn2, eps=1e-5):
    """Pure-JAX NCHW f32 reference (mirrors the PyTorch forward)."""
    def conv(x, w):
        return jax.lax.conv_general_dilated(
            x, w, window_strides=(1, 1), padding=((1, 1), (1, 1)),
            dimension_numbers=("NCHW", "OIHW", "NCHW"))

    def bn(x, p):
        gamma, beta, mean, var = p
        scale = gamma / jnp.sqrt(var + eps)
        bias = beta - mean * scale
        return x * scale[None, :, None, None] + bias[None, :, None, None]

    out = jax.nn.relu(bn(conv(x_nchw, w1), bn1))
    out = bn(conv(out, w2), bn2)
    return jax.nn.relu(out + x_nchw)


if __name__ == "__main__":
    key = jax.random.PRNGKey(0)
    N, C, H, W = 2, 4, 16, 16          # in_channel == out_channel, stride=1, downsample=None

    k = jax.random.split(key, 8)
    x = jax.random.normal(k[0], (N, C, H, W), jnp.float32)
    w1 = jax.random.normal(k[1], (C, C, 3, 3), jnp.float32) * 0.1   # OIHW
    w2 = jax.random.normal(k[2], (C, C, 3, 3), jnp.float32) * 0.1
    bn1 = (jax.random.uniform(k[3], (C,), jnp.float32, 0.5, 1.5),   # gamma
           jax.random.normal(k[4], (C,), jnp.float32) * 0.1,        # beta
           jax.random.normal(k[5], (C,), jnp.float32) * 0.1,        # running_mean
           jax.random.uniform(k[6], (C,), jnp.float32, 0.5, 1.5))   # running_var
    bn2 = (jnp.ones((C,), jnp.float32),
           jnp.zeros((C,), jnp.float32),
           jax.random.normal(k[7], (C,), jnp.float32) * 0.1,
           jnp.ones((C,), jnp.float32))

    out = basic_block_forward(x, w1, w2, bn1, bn2)
    out = jax.block_until_ready(out)

    ref = reference_forward(x, w1, w2, bn1, bn2)
    assert out.shape == (N, C, H, W)
    # Matmul operands are bf16 (f32 accumulation + f32 residual), so compare against the
    # f32 reference with a correspondingly looser tolerance.
    assert jnp.allclose(out, ref, atol=5e-2, rtol=5e-2), "mismatch vs reference"
    print("KERNEL_OK")
</pallas_src>

<mosaic_0001>
module attributes {stable_mosaic.version = 11 : i64} {
  func.func @basic_block_kernel(%arg0: i32, %arg1: memref<1x8x384xbf16, #tpu.memory_space<vmem>>, %arg2: memref<1x8x128xf32, #tpu.memory_space<vmem>>, %arg3: memref<2x384x128xbf16, #tpu.memory_space<vmem>>, %arg4: memref<4x128xf32, #tpu.memory_space<vmem>>, %arg5: memref<1x8x128xf32, #tpu.memory_space<vmem>>) attributes {dimension_semantics = [#tpu.dimension_semantics<parallel>], iteration_bounds = array<i64: 2>, scalar_prefetch = 0 : i64, scratch_operands = 0 : i64, tpu.core_type = #tpu.core_type<tc>, window_params = [{transform_indices = @transform_0, window_bounds = array<i64: 1, 8, 384>}, {transform_indices = @transform_1, window_bounds = array<i64: 1, 8, 128>}, {pipeline_mode = #tpu.pipeline_mode<synchronous>, transform_indices = @transform_2, window_bounds = array<i64: 2, 384, 128>}, {pipeline_mode = #tpu.pipeline_mode<synchronous>, transform_indices = @transform_3, window_bounds = array<i64: 4, 128>}, {transform_indices = @transform_4, window_bounds = array<i64: 1, 8, 128>}]} {
    %c0 = arith.constant 0 : index
    %c0_0 = arith.constant 0 : index
    %0 = vector.load %arg4[%c0, %c0_0] : memref<4x128xf32, #tpu.memory_space<vmem>>, vector<1x128xf32>
    %c1 = arith.constant 1 : index
    %c0_1 = arith.constant 0 : index
    %1 = vector.load %arg4[%c1, %c0_1] : memref<4x128xf32, #tpu.memory_space<vmem>>, vector<1x128xf32>
    %c2 = arith.constant 2 : index
    %c0_2 = arith.constant 0 : index
    %2 = vector.load %arg4[%c2, %c0_2] : memref<4x128xf32, #tpu.memory_space<vmem>>, vector<1x128xf32>
    %c3 = arith.constant 3 : index
    %c0_3 = arith.constant 0 : index
    %3 = vector.load %arg4[%c3, %c0_3] : memref<4x128xf32, #tpu.memory_space<vmem>>, vector<1x128xf32>
    %c0_4 = arith.constant 0 : index
    %c0_5 = arith.constant 0 : index
    %c0_6 = arith.constant 0 : index
    %4 = vector.load %arg1[%c0_4, %c0_5, %c0_6] : memref<1x8x384xbf16, #tpu.memory_space<vmem>>, vector<1x8x384xbf16>
    %5 = vector.shape_cast %4 : vector<1x8x384xbf16> to vector<8x384xbf16>
    %c0_7 = arith.constant 0 : index
    %c0_8 = arith.constant 0 : index
    %c0_9 = arith.constant 0 : index
    %6 = vector.load %arg3[%c0_7, %c0_8, %c0_9] : memref<2x384x128xbf16, #tpu.memory_space<vmem>>, vector<1x384x128xbf16>
    %7 = vector.shape_cast %6 : vector<1x384x128xbf16> to vector<384x128xbf16>
    %cst = arith.constant dense<0.000000e+00> : vector<8x128xf32>
    %8 = tpu.matmul %5, %7, %cst {dimension_numbers = #tpu.dot_dimension_numbers<[1], [0], [0], [1], [0, 0, 1, 1], [], []>} : vector<8x384xbf16>, vector<384x128xbf16>, vector<8x128xf32> -> vector<8x128xf32>
    %9 = vector.broadcast %0 : vector<1x128xf32> to vector<8x128xf32>
    %10 = arith.mulf %8, %9 : vector<8x128xf32>
    %11 = vector.broadcast %1 : vector<1x128xf32> to vector<8x128xf32>
    %12 = arith.addf %10, %11 : vector<8x128xf32>
    %cst_10 = arith.constant 0.000000e+00 : f32
    %13 = vector.broadcast %cst_10 : f32 to vector<8x128xf32>
    %14 = arith.maximumf %12, %13 : vector<8x128xf32>
    %15 = tpu.iota {dimensions = array<i32: 0>} : vector<8x128xi32>
    %c0_i32 = arith.constant 0 : i32
    %16 = vector.broadcast %c0_i32 : i32 to vector<8x128xi32>
    %17 = arith.cmpi eq, %15, %16 : vector<8x128xi32>
    %c1_i32 = arith.constant 1 : i32
    %18 = tpu.dynamic_rotate %14 by %c1_i32 dim 0 : vector<8x128xf32>, i32 -> vector<8x128xf32>
    %cst_11 = arith.constant 0.000000e+00 : f32
    %19 = vector.broadcast %cst_11 : f32 to vector<8x128xf32>
    %20 = arith.select %17, %19, %18 : vector<8x128xi1>, vector<8x128xf32>
    %c7_i32 = arith.constant 7 : i32
    %21 = vector.broadcast %c7_i32 : i32 to vector<8x128xi32>
    %22 = arith.cmpi eq, %15, %21 : vector<8x128xi32>
    %c7_i32_12 = arith.constant 7 : i32
    %23 = tpu.dynamic_rotate %14 by %c7_i32_12 dim 0 : vector<8x128xf32>, i32 -> vector<8x128xf32>
    %cst_13 = arith.constant 0.000000e+00 : f32
    %24 = vector.broadcast %cst_13 : f32 to vector<8x128xf32>
    %25 = arith.select %22, %24, %23 : vector<8x128xi1>, vector<8x128xf32>
    %26 = tpu.concatenate %20, %14, %25 in 1 : vector<8x128xf32>, vector<8x128xf32>, vector<8x128xf32> -> vector<8x384xf32>
    %27 = arith.truncf %26 : vector<8x384xf32> to vector<8x384xbf16>
    %c1_14 = arith.constant 1 : index
    %c0_15 = arith.constant 0 : index
    %c0_16 = arith.constant 0 : index
    %28 = vector.load %arg3[%c1_14, %c0_15, %c0_16] : memref<2x384x128xbf16, #tpu.memory_space<vmem>>, vector<1x384x128xbf16>
    %29 = vector.shape_cast %28 : vector<1x384x128xbf16> to vector<384x128xbf16>
    %cst_17 = arith.constant dense<0.000000e+00> : vector<8x128xf32>
    %30 = tpu.matmul %27, %29, %cst_17 {dimension_numbers = #tpu.dot_dimension_numbers<[1], [0], [0], [1], [0, 0, 1, 1], [], []>} : vector<8x384xbf16>, vector<384x128xbf16>, vector<8x128xf32> -> vector<8x128xf32>
    %31 = vector.broadcast %2 : vector<1x128xf32> to vector<8x128xf32>
    %32 = arith.mulf %30, %31 : vector<8x128xf32>
    %33 = vector.broadcast %3 : vector<1x128xf32> to vector<8x128xf32>
    %34 = arith.addf %32, %33 : vector<8x128xf32>
    %c0_18 = arith.constant 0 : index
    %c0_19 = arith.constant 0 : index
    %c0_20 = arith.constant 0 : index
    %35 = vector.load %arg2[%c0_18, %c0_19, %c0_20] : memref<1x8x128xf32, #tpu.memory_space<vmem>>, vector<1x8x128xf32>
    %36 = vector.shape_cast %35 : vector<1x8x128xf32> to vector<8x128xf32>
    %37 = arith.addf %34, %36 : vector<8x128xf32>
    %cst_21 = arith.constant 0.000000e+00 : f32
    %38 = vector.broadcast %cst_21 : f32 to vector<8x128xf32>
    %39 = arith.maximumf %37, %38 : vector<8x128xf32>
    %c0_22 = arith.constant 0 : index
    %c0_23 = arith.constant 0 : index
    %c0_24 = arith.constant 0 : index
    %40 = vector.load %arg5[%c0_22, %c0_23, %c0_24] : memref<1x8x128xf32, #tpu.memory_space<vmem>>, vector<1x8x128xf32>
    %41 = vector.shape_cast %40 : vector<1x8x128xf32> to vector<8x128xf32>
    %42 = vector.shape_cast %39 : vector<8x128xf32> to vector<1x8x128xf32>
    tpu.vector_store %arg5[%c0_22, %c0_23, %c0_24], %42 {strides = array<i32>} : memref<1x8x128xf32, #tpu.memory_space<vmem>>, vector<1x8x128xf32>,
    return
  }
  func.func @transform_0(%arg0: i32) -> (i32, i32, i32) {
    %c0_i32 = arith.constant 0 : i32
    %c0_i32_0 = arith.constant 0 : i32
    %c0_i32_1 = arith.constant 0 : i32
    return %arg0, %c0_i32, %c0_i32_0 : i32, i32, i32
  }
  func.func @transform_1(%arg0: i32) -> (i32, i32, i32) {
    %c0_i32 = arith.constant 0 : i32
    %c0_i32_0 = arith.constant 0 : i32
    %c0_i32_1 = arith.constant 0 : i32
    return %arg0, %c0_i32, %c0_i32_0 : i32, i32, i32
  }
  func.func @transform_2(%arg0: i32) -> (i32, i32, i32) {
    %c0_i32 = arith.constant 0 : i32
    %c0_i32_0 = arith.constant 0 : i32
    %c0_i32_1 = arith.constant 0 : i32
    %c0_i32_2 = arith.constant 0 : i32
    return %c0_i32, %c0_i32_0, %c0_i32_1 : i32, i32, i32
  }
  func.func @transform_3(%arg0: i32) -> (i32, i32) {
    %c0_i32 = arith.constant 0 : i32
    %c0_i32_0 = arith.constant 0 : i32
    %c0_i32_1 = arith.constant 0 : i32
    return %c0_i32, %c0_i32_0 : i32, i32
  }
  func.func @transform_4(%arg0: i32) -> (i32, i32, i32) {
    %c0_i32 = arith.constant 0 : i32
    %c0_i32_0 = arith.constant 0 : i32
    %c0_i32_1 = arith.constant 0 : i32
    return %arg0, %c0_i32, %c0_i32_0 : i32, i32, i32
  }
}

</mosaic_0001>

<bundles_post_ra>
// kernel: tpu_custom_call.1
= control target key start
LH: loop header
LB: loop body
LE: loop exit
PB: predicated region body
PF: predicated region fallthrough
CT: control target
= control target key end

     0   :  { %9 = vsyncpa [#allocation3], 0  ;;  %s1759_s0 = inlined_call_operand.hbm [shape: bf16[2,8,384], index: 0, kind: input, shape index: {}]   ;;  %s1760_s1 = inlined_call_operand.hbm [shape: f32[2,8,128], index: 1, kind: input, shape index: {}]   ;;  %s1761_s2 = inlined_call_operand.hbm [shape: bf16[2,384,128], index: 2, kind: input, shape index: {}]   ;;  %s1762_s3 = inlined_call_operand.vmem [shape: f32[4,128], index: 3, kind: input, shape index: {}]   ;;  %s1763_s4 = inlined_call_operand.hbm [shape: f32[2,8,128], index: 4, kind: output, shape index: {}]  }
   0x1   :  { %11 = vsyncpa [#allocation3 + $0x1], 0 }
   0x2   :  { %12 = vsyncpa [#allocation6], 0 }
   0x3   :  { %14 = vsyncpa [#allocation6 + $0x1], 0 }
   0x4   :  { %15 = vsyncpa [#allocation4], 0 }
   0x5   :  { %17 = vsyncpa [#allocation4 + $0x1], 0  ;;  %s1481_s15 = smov 0   ;;  %s1483_s16 = smov 0  }
   0x6   :  { %s1485_s17 = smov 0   ;;  %s1487_s18 = smov 0  }
   0x7 LB: > { %s1502_s19 = sadd.s32 4294967295, %s1446_s18   ;;  %s980_s20 = sadd.s32 4294967294, %s1446_s18   ;;  %s1446_s18 = sphi %s1487_s18, %s1785_s18   ;;  %s1442_s17 = sphi %s1485_s17, %s1784_s17   ;;  %s1438_s16 = sphi %s1483_s16, %s1783_s16   ;;  %s1434_s15 = sphi %s1481_s15, %s1782_s15  }
   0x8   : > { %p43_p0 = scmp.ne.s32.totalorder %s1438_s16, %s1434_s15  ;;  %p1764_p1 = scmp.eq.s32.totalorder %s1502_s19, 0 }
   0x9   : > { %p141_p3 = scmp.eq.s32.totalorder %s980_s20, 1  ;;  %p981_p5 = scmp.ge.s32.totalorder %s1446_s18, 1 }
   0xa   : > { %p1511_p4 = por %p1764_p1, %p43_p0  ;;  %p148_p7 = scmp.lt.s32.totalorder %s1446_s18, 3 }
   0xb   : > { %p1516_p6 = por %p141_p3, %p43_p0  ;;  %s1448_s24 = smov [#allocation7]  }
   0xc   : > { %s1768_s21 = scalar_select %p1511_p4, 1, 0 }
   0xd   : > { %s1769_s22 = scalar_select %p1516_p6, 1, 0 }
   0xe   : > { %p1521_p8 = pnand %p981_p5, %p148_p7  ;;  %s160_s25 = sshll.u32 %s1448_s24, 4  ;;  %s1525_s25 = int_to_ptr.vmem [resolvable:$true] %s160_s25 }
   0xf   : > { %s1537_s27 = sadd.s32 1, %s1446_s18   ;;  %s30_s28 = sadd.s32 1, %s1442_s17 }
  0x10   : > { %s1770_s23 = scalar_select %p1521_p8, 1, 0 }
  0x11   : > { %p1177_p9 = pneg %p1521_p8  ;;  %s27_s29 = ssub.s32 %s1446_s18, %s1537_s27 }
  0x12   : > { %s1284_s6 = scalar_lea.hbm %s1761_s2, 6144 }
  0x13   : > { %p1532_p11 = pnand %p1177_p9, %p1764_p1  ;;  %p1285_p12 = scmp.ne.s32.totalorder %s1761_s2, %s1284_s6 }
  0x14   : > { %p1291_p5 = scmp.lt.u32.totalorder %s1284_s6, %s1761_s2 }
  0x15   : > { %p1286_p13 = pneg %p1532_p11 }
  0x17   : > { %p1287_p0 = pnand %p1286_p13, %p1285_p12 }
  0x19   : > { %p1288_p3 = pneg %p1287_p0 }
  0x1b   : > { %p1293_p7 = pnand %p1291_p5, %p1288_p3 }
  0x1d   : > { %1296 = shalt.err (!%p1293_p7)
}
  0x1e   : > { %s1297_s11 = scalar_lea.vmem %s1525_s25, 6144  ;;  %p1305_p2 = scmp.lt.s32.totalorder %s1525_s25, %s1525_s25 }
  0x1f   : > { %p1298_p9 = scmp.ne.s32.totalorder %s1525_s25, %s1297_s11  ;;  %p1306_p6 = scmp.lt.s32.totalorder %s1297_s11, %s1297_s11 }
  0x21   : > { %p1300_p10 = pnand %p1298_p9, %p1286_p13  ;;  %p1307_p4 = por %p1306_p6, %p1305_p2 }
  0x23   : > { %p1301_p1 = pneg %p1300_p10 }
  0x25   : > { %p1308_p8 = pnand %p1307_p4, %p1301_p1 }
  0x27   : > { %1311 = shalt.err (!%p1308_p8)
}
  0x28   : > { %s1449_s12 = smov 64   ;;  %s1450_s13 = smov 4  }
  0x29   : > { %1180 = dma.hbm_to_vmem [thread:$0]  (!%p1532_p11), %s1761_s2, 6144, %s1525_s25, [#allocation6], %s1449_s12, %s1449_s12, %s1450_s13  }
  0x2a   : > { %p28_p1 = scmp.eq.s32.totalorder %s27_s29, 0  ;;  %p37_p2 = scmp.ne.s32.totalorder %s1442_s17, %s1438_s16 }
  0x2b   : > { %p38_p4 = scmp.eq.s32.totalorder %s1446_s18, 0  ;;  %p1193_p6 = scmp.lt.s32.totalorder %s1446_s18, 2 }
  0x2c   : > { %s1568_s24 = scalar_select %p28_p1, %s1442_s17, %s30_s28  }
  0x2d   : > { %p39_p8 = por %p38_p4, %p37_p2  ;;  %p1772_p10 = scmp.eq.s32.totalorder %s1502_s19, 1 }
  0x2e   : > { %s1577_s5 = sand.u32 1, %s1442_s17   ;;  %s1165_s26 = smul.u32 192, %s1446_s18 }
  0x2f   : > { %p1572_p12 = por %p1772_p10, %p37_p2  ;;  %s1164_s6 = smul.u32 12, %s1577_s5 }
  0x30   : > { %s1584_s29 = scalar_lea.hbm %s1759_s0, %s1165_s26  ;;  %p1586_p11 = pnand %p1193_p6, %p39_p8 }
  0x31   : > { %s1773_s30 = scalar_select %p1572_p12, 1, 0 }
  0x32   : > { %s196_s8 = sand.u32 1, %s1446_s18   ;;  %s181_s9 = scalar_lea.vmem [#allocation2], %s1164_s6 }
  0x33   : > { %s189_s10 = sshll.u32 %s181_s9, 4  ;;  %s178_s11 = scalar_lea.sflag [#allocation3], %s1577_s5  ;;  %s1591_s10 = int_to_ptr.vmem [resolvable:$true] %s189_s10 }
  0x34   : > { %s1312_s12 = scalar_lea.hbm %s1584_s29, 192  ;;  %p1314_p0 = pneg %p1586_p11 }
  0x35   : > { %p1313_p13 = scmp.ne.s32.totalorder %s1584_s29, %s1312_s12  ;;  %s1317_s20 = scalar_lea.hbm %s1759_s0, 384 }
  0x36   : > { %p1318_p7 = scmp.lt.u32.totalorder %s1584_s29, %s1759_s0  ;;  %p1319_p9 = scmp.lt.u32.totalorder %s1317_s20, %s1312_s12 }
  0x37   : > { %p1315_p3 = pnand %p1314_p0, %p1313_p13  ;;  %p1321_p2 = scmp.lt.u32.totalorder %s1312_s12, %s1584_s29 }
  0x38   : > { %p1320_p1 = por %p1319_p9, %p1318_p7 }
  0x39   : > { %p1316_p5 = pneg %p1315_p3 }
  0x3a   : > { %p1322_p4 = por %p1321_p2, %p1320_p1 }
  0x3c   : > { %p1323_p6 = pnand %p1322_p4, %p1316_p5 }
  0x3e   : > { %1326 = shalt.err (!%p1323_p6)
}
  0x3f   : > { %s1327_s6 = scalar_lea.vmem %s1591_s10, 192  ;;  %s1451_s25 = smov [#allocation2]  }
  0x40   : > { %p1328_p8 = scmp.ne.s32.totalorder %s1591_s10, %s1327_s6  ;;  %s1332_s9 = sshll.u32 %s1451_s25, 4  ;;  %s1333_s9 = int_to_ptr.vmem [resolvable:$false] %s1332_s9 }
  0x41   : > { %s1334_s13 = scalar_lea.vmem %s1333_s9, 384  ;;  %p1335_p3 = scmp.lt.s32.totalorder %s1591_s10, %s1333_s9 }
  0x42   : > { %p1330_p10 = pnand %p1328_p8, %p1314_p0  ;;  %p1336_p7 = scmp.lt.s32.totalorder %s1334_s13, %s1327_s6 }
  0x44   : > { %p1331_p13 = pneg %p1330_p10  ;;  %p1337_p9 = por %p1336_p7, %p1335_p3 }
  0x46   : > { %p1338_p1 = pnand %p1337_p9, %p1331_p13 }
  0x48   : > { %1341 = shalt.err (!%p1338_p1)
}
  0x49   : > { %1184 = dma.hbm_to_vmem [thread:$0]  (!%p1586_p11), %s1584_s29, 192, %s1591_s10, %s178_s11  }
  0x4a   : > { %s985_s12 = sshll.u32 %s1577_s5, 3  ;;  %s986_s14 = sshll.u32 %s1446_s18, 7 }
  0x4b   : > { %s1624_s7 = scalar_lea.hbm %s1760_s1, %s986_s14  ;;  %s200_s6 = scalar_lea.vmem [#allocation5], %s985_s12 }
  0x4c   : > { %s207_s25 = sshll.u32 %s200_s6, 4  ;;  %s197_s9 = scalar_lea.sflag [#allocation6], %s196_s8  ;;  %s208_s25 = int_to_ptr.vmem [resolvable:$true] %s207_s25 }
  0x4d   : > { %s1342_s13 = scalar_lea.hbm %s1624_s7, 128  ;;  %s1347_s10 = scalar_lea.hbm %s1760_s1, 256 }
  0x4e   : > { %p1343_p5 = scmp.ne.s32.totalorder %s1624_s7, %s1342_s13  ;;  %p1348_p6 = scmp.lt.u32.totalorder %s1624_s7, %s1760_s1 }
  0x4f   : > { %p1349_p8 = scmp.lt.u32.totalorder %s1347_s10, %s1342_s13  ;;  %p1351_p13 = scmp.lt.u32.totalorder %s1342_s13, %s1624_s7 }
  0x50   : > { %p1345_p2 = pnand %p1343_p5, %p1314_p0 }
  0x51   : > { %p1350_p10 = por %p1349_p8, %p1348_p6 }
  0x52   : > { %p1346_p4 = pneg %p1345_p2 }
  0x53   : > { %p1352_p3 = por %p1351_p13, %p1350_p10 }
  0x55   : > { %p1353_p7 = pnand %p1352_p3, %p1346_p4 }
  0x57   : > { %1356 = shalt.err (!%p1353_p7)
}
  0x58   : > { %s1357_s8 = scalar_lea.vmem %s208_s25, 128  ;;  %s1452_s12 = smov [#allocation5]  }
  0x59   : > { %p1358_p9 = scmp.ne.s32.totalorder %s208_s25, %s1357_s8  ;;  %s1362_s20 = sshll.u32 %s1452_s12, 4  ;;  %s1363_s20 = int_to_ptr.vmem [resolvable:$false] %s1362_s20 }
  0x5a   : > { %s1364_s26 = scalar_lea.vmem %s1363_s20, 256  ;;  %p1365_p2 = scmp.lt.s32.totalorder %s208_s25, %s1363_s20 }
  0x5b   : > { %p1360_p1 = pnand %p1358_p9, %p1314_p0  ;;  %p1366_p12 = scmp.lt.s32.totalorder %s1364_s26, %s1357_s8 }
  0x5d   : > { %p1361_p5 = pneg %p1360_p1  ;;  %p1367_p6 = por %p1366_p12, %p1365_p2 }
  0x5f   : > { %p1368_p8 = pnand %p1367_p6, %p1361_p5 }
  0x61   : > { %1371 = shalt.err (!%p1368_p8)
}
  0x62   : > { %1187 = dma.hbm_to_vmem [thread:$0]  (!%p1586_p11), %s1624_s7, 128, %s208_s25, %s197_s9  }
  0x63   : > { %p1775_p4 = scmp.ne.s32.totalorder %s1770_s23, 0 }
  0x64   : > { %s1650_s6 = sand.u32 (!%p1775_p4), 1, %s1438_s16   ;;  %p1776_p12 = scmp.ne.s32.totalorder (!%p1775_p4), %s1768_s21, 0 }
  0x65   : > { %216 = sbr.rel (%p1775_p4) target bundleno = 615 (0x267), region = 36  ;;  %s219_s5 = scalar_lea.sflag (!%p1775_p4), [#allocation3], %s1650_s6 }
  0x66   : > { %s1166_s13 = smul.u32 (!%p1775_p4), 12, %s1650_s6 }
  0x68   : > { %s1654_s29 = scalar_lea.vmem (!%p1775_p4), [#allocation2], %s1166_s13 }
  0x6c   : > { %1417 = dma.done.wait (%p1776_p12), %s219_s5, 192  }
  0x6d   : > { %1419 = vsyncadd (%p1776_p12), %s219_s5, 4294967104  ;;  %s227_s23 = sand.u32 1, %s1502_s19   ;;  %s988_s28 = sshll.u32 %s1650_s6, 3 }
  0x6e   : > { %s228_s7 = scalar_lea.sflag [#allocation6], %s227_s23  ;;  %s1664_s25 = scalar_lea.vmem [#allocation5], %s988_s28 }
  0x6f   : > { %1421 = dma.done.wait (%p1776_p12), %s228_s7, 128  }
  0x70   : > { %1423 = vsyncadd (%p1776_p12), %s228_s7, 4294967168  ;;  %p1777_p11 = scmp.eq.s32.totalorder %s1502_s19, 0 }
  0x72   : > { %1425 = dma.done.wait (%p1777_p11), [#allocation6], 6144   ;;  %p1778_p0 = pmov %p1777_p11 }
  0x73   : > { %v1453_v0 = vmov 0.0   ;;  %vm1454_vm0 = vmmov 0   ;;  %v1233_v1 = vld [vmem:[#allocation7 + $0x40] sm:$0xff]   ;;  %v1236_v4 = vld [vmem:[#allocation7 + $0x48] sm:$0xff]   ;;  %v1239_v7 = vld [vmem:[#allocation7 + $0x50] sm:$0xff]   ;;  %v566_v56 = vlaneseq  ;;  %s1057_s26 = sshll.u32 %s1502_s19, 7 }
  0x74   : > { %1427 = vsyncadd (%p1778_p0), [#allocation6], 4294961152  ;;  %1124 = vmatprep.subr.bf16.mxu1 %v1453_v0  ;;  %1140 = vmatprep.mubr.msk.bf16.mxu1 %vm1454_vm0, %v1453_v0  ;;  %v1234_v2 = vld [vmem:[#allocation7] sm:$0xff]   ;;  %v1237_v5 = vld [vmem:[#allocation7 + $0x8] sm:$0xff]   ;;  %s264_s13 = scalar_lea.vmem [#allocation8], %s988_s28  ;;  %s1715_s7 = scalar_lea.hbm %s1763_s4, %s1057_s26 }
  0x75   : > { %1062 = vmatprep.subr.bf16.mxu0 %v1233_v1  ;;  %v1235_v3 = vld [vmem:[#allocation7 + $0x80] sm:$0xff]   ;;  %v1238_v6 = vld [vmem:[#allocation7 + $0x88] sm:$0xff]   ;;  %v1240_v8 = vld [vmem:[#allocation7 + $0x10] sm:$0xff]   ;;  %s878_s5 = sshll.u32 %s264_s13, 4  ;;  %s865_s21 = scalar_lea.sflag [#allocation4], %s1650_s6  ;;  %s1717_s5 = int_to_ptr.vmem [resolvable:$true] %s878_s5 }
  0x76   : > { %1063 = vmatpush3.bf16.msra.mxu0 %v1234_v2  ;;  %1125 = vmatpush3.bf16.msra.mxu1 %v1235_v3  ;;  %v1241_v9 = vld [vmem:[#allocation7 + $0x90] sm:$0xff]   ;;  %v1242_v10 = vld [vmem:[#allocation7 + $0x58] sm:$0xff]   ;;  %v1245_v13 = vld [vmem:[#allocation7 + $0x60] sm:$0xff]   ;;  %v567_v2 = vshrl.u32 %v566_v56, 7  ;;  %p1779_p13 = scmp.ne.s32.totalorder %s1773_s30, 0  ;;  %s1455_s19 = smov [#allocation8]  }
  0x77   : > { %1064 = vmatprep.subr.bf16.mxu0 %v1236_v4  ;;  %1126 = vmatprep.subr.bf16.mxu1 %v1453_v0  ;;  %v1243_v11 = vld [vmem:[#allocation7 + $0x18] sm:$0xff]   ;;  %v1246_v14 = vld [vmem:[#allocation7 + $0x20] sm:$0xff]   ;;  %v1248_v16 = vld [vmem:[#allocation7 + $0x68] sm:$0xff]   ;;  %s1376_s28 = sshll.u32 %s1455_s19, 4  ;;  %s1377_s28 = int_to_ptr.vmem [resolvable:$false] %s1376_s28 }
  0x78   : > { %v1244_v12 = vld [vmem:[#allocation7 + $0x98] sm:$0xff]   ;;  %v1247_v15 = vld [vmem:[#allocation7 + $0xa0] sm:$0xff]   ;;  %v1249_v17 = vld [vmem:[#allocation7 + $0x28] sm:$0xff]   ;;  %vm1060_vm1 = vcmp.ne.s32.totalorder %v567_v2, 0  ;;  %vm1061_vm2 = vcmp.ne.s32.totalorder %v567_v2, 7  ;;  %s1378_s9 = scalar_lea.vmem %s1377_s28, 256  ;;  %p1379_p9 = scmp.lt.s32.totalorder %s1717_s5, %s1377_s28 }
  0x79   : > { %v1250_v18 = vld [vmem:[#allocation7 + $0xa8] sm:$0xff]   ;;  %v1251_v19 = vld [vmem:[#allocation7 + $0x70] sm:$0xff]   ;;  %v1254_v22 = vld [vmem:[#allocation7 + $0x78] sm:$0xff]  }
  0x7a   : > { %1065 = vmatpush3.bf16.msra.mxu0 %v1237_v5  ;;  %1127 = vmatpush3.bf16.msra.mxu1 %v1238_v6  ;;  %v1252_v20 = vld [vmem:[#allocation7 + $0x30] sm:$0xff]   ;;  %v270_v23 = vld [vmem:[%s1654_s29] sm:$0xff]  ;;  %v1259_v28 = vld [vmem:[%s1654_s29 + $0x8] ss:$0 sps:$4 sm:$0xff]  }
  0x7b   : > { %1066 = vmatprep.subr.bf16.mxu0 %v1239_v7  ;;  %1128 = vmatprep.subr.bf16.mxu1 %v1453_v0  ;;  %v1253_v21 = vld [vmem:[#allocation7 + $0xb0] sm:$0xff]   ;;  %v992_v24 = vcombine.high %v270_v23, %v270_v23  ;;  %v1255_v25 = vld [vmem:[#allocation7 + $0x38] sm:$0xff]   ;;  %v1260_v27 = vld [vmem:[#allocation7 + $0x100] sm:$0xff]   ;;  %v991_v29 = vcombine.low %v270_v23, %v270_v23 }
  0x7c   : > { %v1256_v26 = vld [vmem:[#allocation7 + $0xb8] sm:$0xff]   ;;  %v1261_v30 = vld [vmem:[#allocation7 + $0xc0] sm:$0xff]   ;;  %v1263_v32 = vld [vmem:[#allocation7 + $0x108] sm:$0xff]  }
  0x7d   : > { %507 = vmatprep.mubr.bf16.mxu0 %v992_v24  ;;  %v1262_v31 = vld [vmem:[#allocation7 + $0x140] sm:$0xff]   ;;  %v1264_v33 = vld [vmem:[#allocation7 + $0xc8] sm:$0xff]   ;;  %v1266_v35 = vld [vmem:[#allocation7 + $0x110] sm:$0xff]  }
  0x7e   : > { %1067 = vmatpush3.bf16.msra.mxu0 %v1240_v8  ;;  %1129 = vmatpush3.bf16.msra.mxu1 %v1241_v9  ;;  %v1265_v34 = vld [vmem:[#allocation7 + $0x148] sm:$0xff]   ;;  %v1267_v36 = vld [vmem:[#allocation7 + $0xd0] sm:$0xff]   ;;  %v1269_v38 = vld [vmem:[#allocation7 + $0x118] sm:$0xff]  }
  0x7f   : > { %1068 = vmatprep.subr.bf16.mxu0 %v1242_v10  ;;  %1130 = vmatprep.subr.bf16.mxu1 %v1453_v0  ;;  %v1268_v37 = vld [vmem:[#allocation7 + $0x150] sm:$0xff]   ;;  %v1270_v39 = vld [vmem:[#allocation7 + $0xd8] sm:$0xff]   ;;  %v1272_v41 = vld [vmem:[#allocation7 + $0x120] sm:$0xff]  }
  0x80   : > { %v1271_v40 = vld [vmem:[#allocation7 + $0x158] sm:$0xff]   ;;  %v1273_v42 = vld [vmem:[#allocation7 + $0xe0] sm:$0xff]   ;;  %v1275_v44 = vld [vmem:[#allocation7 + $0x128] sm:$0xff]  }
  0x81   : > { %v1274_v43 = vld [vmem:[#allocation7 + $0x160] sm:$0xff]   ;;  %v1276_v45 = vld [vmem:[#allocation7 + $0xe8] sm:$0xff]   ;;  %v1278_v47 = vld [vmem:[#allocation7 + $0x130] sm:$0xff]  }
  0x82   : > { %1069 = vmatpush3.bf16.msra.mxu0 %v1243_v11  ;;  %1131 = vmatpush3.bf16.msra.mxu1 %v1244_v12  ;;  %v1277_v46 = vld [vmem:[#allocation7 + $0x168] sm:$0xff]   ;;  %v1279_v48 = vld [vmem:[#allocation7 + $0xf0] sm:$0xff]   ;;  %v1281_v50 = vld [vmem:[#allocation7 + $0x138] sm:$0xff]  }
  0x83   : > { %1070 = vmatprep.subr.bf16.mxu0 %v1245_v13  ;;  %1132 = vmatprep.subr.bf16.mxu1 %v1453_v0  ;;  %v1280_v49 = vld [vmem:[#allocation7 + $0x170] sm:$0xff]   ;;  %v1282_v51 = vld [vmem:[#allocation7 + $0xf8] sm:$0xff]   ;;  %vm1046_vm3 = vmpackc.low %vm1060_vm1, %vm1060_vm1 }
  0x84   : > { %v1283_v52 = vld [vmem:[#allocation7 + $0x178] sm:$0xff]   ;;  %vm1051_vm4 = vmpackc.low %vm1061_vm2, %vm1061_vm2 }
  0x85   : > { %v1018_v60 = vld [vmem:[%s1762_s3] ss:$0 sm:$0xff]  ;;  %v1019_v1 = vld [vmem:[%s1762_s3 + $0x1] ss:$0 sm:$0xff] }
  0x86   : > { %1071 = vmatpush3.bf16.msra.mxu0 %v1246_v14  ;;  %1133 = vmatpush3.bf16.msra.mxu1 %v1247_v15  ;;  %v860_v24 = vld [vmem:[%s1664_s25] sm:$0xff]  ;;  %s1372_s25 = scalar_lea.vmem %s1717_s5, 128 }
  0x87   : > { %1072 = vmatprep.subr.bf16.mxu0 %v1248_v16  ;;  %1134 = vmatprep.subr.bf16.mxu1 %v1453_v0  ;;  %p1373_p10 = scmp.ne.s32.totalorder %s1717_s5, %s1372_s25  ;;  %p1380_p1 = scmp.lt.s32.totalorder %s1378_s9, %s1372_s25 }
  0x89   : > { %p1374_p3 = pnand %p1373_p10, %p1779_p13  ;;  %p1381_p5 = por %p1380_p1, %p1379_p9 }
  0x8a   : > { %1073 = vmatpush3.bf16.msra.mxu0 %v1249_v17  ;;  %1135 = vmatpush3.bf16.msra.mxu1 %v1250_v18  ;;  %v1054_v18 = vld [vmem:[%s1762_s3 + $0x2] ss:$0 sm:$0xff] }
  0x8b   : > { %1074 = vmatprep.subr.bf16.mxu0 %v1251_v19  ;;  %1136 = vmatprep.subr.bf16.mxu1 %v1453_v0  ;;  %p1375_p7 = pneg %p1374_p3 }
  0x8d   : > { %p1382_p2 = pnand %p1381_p5, %p1375_p7 }
  0x8e   : > { %1075 = vmatpush3.bf16.msra.mxu0 %v1252_v20  ;;  %1137 = vmatpush3.bf16.msra.mxu1 %v1253_v21 }
  0x8f   : > { %1076 = vmatprep.subr.bf16.mxu0 %v1254_v22  ;;  %1138 = vmatprep.subr.bf16.mxu1 %v1453_v0  ;;  %v1055_v22 = vld [vmem:[%s1762_s3 + $0x3] ss:$0 sm:$0xff] }
  0x92   : > { %1077 = vmatpush3.bf16.msra.mxu0 %v1255_v25  ;;  %1139 = vmatpush3.bf16.msra.mxu1 %v1256_v26 }
  0x93   : > { %1093 = vmatprep.subr.bf16.mxu0 %v1260_v27  ;;  %1144 = vmatprep.subr.bf16.mxu1 %v1453_v0 }
  0x95   : > { %508 = vmatmul.mubr.bf16.vlgmr.msra.gmra.mrb[0].mxu0 %v991_v29  ;;  %1141 = vmatmul.mubr.bf16.vlgmr.msra.gmra.mrb[0].mxu1 %v1259_v28 }
  0x96   : > { %1094 = vmatpush3.bf16.msra.mxu0 %v1261_v30  ;;  %1145 = vmatpush3.bf16.msra.mxu1 %v1262_v31 }
  0x97   : > { %1095 = vmatprep.subr.bf16.mxu0 %v1263_v32  ;;  %1146 = vmatprep.subr.bf16.mxu1 %v1453_v0 }
  0x98   : > { %1160 = vmatprep.mubr.msk.bf16.mxu1 %vm1454_vm0, %v1453_v0 }
  0x9a   : > { %1096 = vmatpush3.bf16.msra.mxu0 %v1264_v33  ;;  %1147 = vmatpush3.bf16.msra.mxu1 %v1265_v34 }
  0x9b   : > { %1097 = vmatprep.subr.bf16.mxu0 %v1266_v35  ;;  %1148 = vmatprep.subr.bf16.mxu1 %v1453_v0 }
  0x9e   : > { %1098 = vmatpush3.bf16.msra.mxu0 %v1267_v36  ;;  %1149 = vmatpush3.bf16.msra.mxu1 %v1268_v37 }
  0x9f   : > { %1099 = vmatprep.subr.bf16.mxu0 %v1269_v38  ;;  %1150 = vmatprep.subr.bf16.mxu1 %v1453_v0 }
  0xa2   : > { %1100 = vmatpush3.bf16.msra.mxu0 %v1270_v39  ;;  %1151 = vmatpush3.bf16.msra.mxu1 %v1271_v40 }
  0xa3   : > { %1152 = vmatprep.subr.bf16.mxu1 %v1453_v0  ;;  %1101 = vmatprep.subr.bf16.mxu0 %v1272_v41 }
  0xa6   : > { %1102 = vmatpush3.bf16.msra.mxu0 %v1273_v42  ;;  %1153 = vmatpush3.bf16.msra.mxu1 %v1274_v43 }
  0xa7   : > { %1154 = vmatprep.subr.bf16.mxu1 %v1453_v0  ;;  %1103 = vmatprep.subr.bf16.mxu0 %v1275_v44 }
  0xaa   : > { %1104 = vmatpush3.bf16.msra.mxu0 %v1276_v45  ;;  %1155 = vmatpush3.bf16.msra.mxu1 %v1277_v46 }
  0xab   : > { %1156 = vmatprep.subr.bf16.mxu1 %v1453_v0  ;;  %1105 = vmatprep.subr.bf16.mxu0 %v1278_v47 }
  0xae   : > { %1106 = vmatpush3.bf16.msra.mxu0 %v1279_v48  ;;  %1157 = vmatpush3.bf16.msra.mxu1 %v1280_v49 }
  0xaf   : > { %1158 = vmatprep.subr.bf16.mxu1 %v1453_v0  ;;  %1107 = vmatprep.subr.bf16.mxu0 %v1281_v50 }
  0xb2   : > { %1108 = vmatpush3.bf16.msra.mxu0 %v1282_v51  ;;  %1159 = vmatpush3.bf16.msra.mxu1 %v1283_v52 }
 0x168   : > { %v1078_v53 = vpop.f32.mrb[0].mxu0  ;;  %v549_v54 = vpop.f32.mrb[0].mxu1 }
 0x169   : > { %v1079_v55 = vpop.f32.mrb[1].mxu0  ;;  %v1142_v58 = vpop.f32.mrb[1].mxu1 }
 0x16a   : > { %v1080_v57 = vadd.f32 %v1079_v55, %v1078_v53  ;;  %v1081_v59 = vpop.f32.mrb[2].mxu0  ;;  %v552_v61 = vpop.f32.mrb[2].mxu1 }
 0x16b   : > { %v1082_v62 = vpop.f32.mrb[3].mxu0  ;;  %v1143_v0 = vpop.f32.mrb[3].mxu1 }
 0x16c   : > { %v550_v63 = vadd.f32 %v1080_v57, %v549_v54 }
 0x16e   : > { %v559_v3 = vmul.f32 %v1018_v60, %v550_v63 }
 0x170   : > { %v564_v4 = vadd.f32 %v1019_v1, %v559_v3 }
 0x172   : > { %v565_v5 = vmax.f32 %v564_v4, 0.0 }
 0x174   : > { %v569_v6 = vrot.slane %v565_v5, 7  ;;  %v572_v7 = vrot.slane %v565_v5, 1  ;;  %v575_v8 = vpack.c.bf16 %v565_v5, %v565_v5 }
 0x176   : > { %802 = vmatprep.mubr.bf16.mxu0 %v575_v8  ;;  %v1047_v9 = vpack.c.bf16 %v569_v6, %v569_v6  ;;  %v1052_v10 = vpack.c.bf16 %v572_v7, %v572_v7 }
 0x178   : > { %1048 = vmatmul.mubr.msk.bf16.vlgmr.msra.gmra.mrb[4].mxu0 %vm1046_vm3, %v1047_v9  ;;  %1161 = vmatmul.mubr.msk.bf16.vlgmr.msra.gmra.mrb[4].mxu1 %vm1051_vm4, %v1052_v10 }
 0x24b   : > { %v1109_v11 = vpop.f32.mrb[4].mxu0  ;;  %v844_v12 = vpop.f32.mrb[4].mxu1 }
 0x24c   : > { %v1110_v13 = vpop.f32.mrb[5].mxu0  ;;  %v1162_v14 = vpop.f32.mrb[5].mxu1 }
 0x24d   : > { %v1111_v15 = vadd.f32 %v1110_v13, %v1109_v11  ;;  %v1112_v16 = vpop.f32.mrb[6].mxu0  ;;  %v847_v17 = vpop.f32.mrb[6].mxu1 }
 0x24e   : > { %v1113_v19 = vpop.f32.mrb[7].mxu0  ;;  %v1163_v20 = vpop.f32.mrb[7].mxu1 }
 0x24f   : > { %v845_v21 = vadd.f32 %v1111_v15, %v844_v12 }
 0x251   : > { %v854_v23 = vmul.f32 %v1054_v18, %v845_v21 }
 0x253   : > { %v859_v25 = vadd.f32 %v1055_v22, %v854_v23 }
 0x255   : > { %v861_v26 = vadd.f32 %v860_v24, %v859_v25 }
 0x257   : > { %v862_v27 = vmax.f32 %v861_v26, 0.0 }
 0x259   : > { %863 = vst [vmem:[%s264_s13] sm:$0xff] %v862_v27 }
 0x25a   : > { %1385 = shalt.err (!%p1382_p2)
}
 0x25b   : > { %s1386_s6 = scalar_lea.hbm %s1715_s7, 128  ;;  %s1390_s14 = scalar_lea.hbm %s1763_s4, 256 }
 0x25c   : > { %p1387_p6 = scmp.ne.s32.totalorder %s1715_s7, %s1386_s6  ;;  %p1391_p12 = scmp.lt.u32.totalorder %s1715_s7, %s1763_s4 }
 0x25d   : > { %p1392_p11 = scmp.lt.u32.totalorder %s1390_s14, %s1386_s6  ;;  %p1394_p10 = scmp.lt.u32.totalorder %s1386_s6, %s1715_s7 }
 0x25e   : > { %p1388_p8 = pnand %p1387_p6, %p1779_p13 }
 0x25f   : > { %p1393_p0 = por %p1392_p11, %p1391_p12 }
 0x260   : > { %p1389_p4 = pneg %p1388_p8 }
 0x261   : > { %p1395_p3 = por %p1394_p10, %p1393_p0 }
 0x263   : > { %p1396_p7 = pnand %p1395_p3, %p1389_p4 }
 0x265   : > { %1399 = shalt.err (!%p1396_p7)
}
 0x266   : > { %1175 = dma.vmem_to_hbm [thread:$0]  (%p1779_p13), %s1717_s5, 128, %s1715_s7, %s865_s21  }
 0x267 PF: > { %s890_s20 = sand.u32 1, %s1434_s15   ;;  %p1780_p9 = scmp.ne.s32.totalorder %s1769_s22, 0 }
 0x268   : > { %p1781_p1 = scmp.ge.s32.totalorder %s1446_s18, 2  ;;  %s891_s26 = scalar_lea.sflag [#allocation4], %s890_s20 }
 0x26a   : > { %p1189_p5 = pnand %p1781_p1, %p1780_p9 }
 0x26c   : > { %1429 = dma.done.wait (!%p1189_p5), %s891_s26, 128  }
 0x26d   : > { %1431 = vsyncadd (!%p1189_p5), %s891_s26, 4294967168  ;;  %p20_p2 = scmp.ge.s32.totalorder %s1537_s27, 4   ;;  %s1782_s15 = smov %s1438_s16 }
 0x26e   : > { %s1783_s16 = smov %s1442_s17  ;;  %s1784_s17 = smov %s1568_s24 }
 0x26f   : > { %s1785_s18 = smov %s1537_s27  ;;  %22 = sbr.rel (!%p20_p2) target bundleno = 7 (0x7), region = 99 }
 0x276   :  { %896 = vsyncpa [#allocation3], 1 }
 0x277   :  { %898 = vsyncpa [#allocation3 + $0x1], 1 }
 0x278   :  { %899 = vsyncpa [#allocation6], 1 }
 0x279   :  { %901 = vsyncpa [#allocation6 + $0x1], 1 }
 0x27a   :  { %902 = vsyncpa [#allocation4], 1 }
 0x27b   :  { %904 = vsyncpa [#allocation4 + $0x1], 1 }

</bundles_post_ra>
